<compile_context>
chip_gen: v5e
topology: v5e:2x2
jax: 0.10.0
libtpu: 0.0.40
codegen_flags: <defaults>
</compile_context>

<pallas_src>
import jax
import jax.numpy as jnp
from jax import lax
from jax.experimental import pallas as pl
from jax.experimental.pallas import tpu as pltpu


def _geglu_kernel(x_ref, out_ref):
    # x_ref  : (2*dim, TILE_HW) VMEM tile  (value rows first, gate rows second)
    # out_ref: (dim,   TILE_HW) VMEM tile
    dim = out_ref.shape[0]
    v = x_ref[:dim, :]
    g = x_ref[dim:, :]

    # Exact (erf-based) GELU, matching torch.nn.GELU() defaults.
    gf = g.astype(jnp.float32)
    gelu_g = 0.5 * gf * (1.0 + lax.erf(gf * jnp.float32(0.7071067811865476)))

    if out_ref.dtype == jnp.float32:
        out_ref[...] = v * gelu_g
    else:
        # bf16/narrow storage: keep the multiply in the storage dtype
        # (bf16 VALU on v6e/v7x); erf itself stays in f32 for accuracy.
        out_ref[...] = v * gelu_g.astype(out_ref.dtype)


def _round_up(x, m):
    return (x + m - 1) // m * m


def geglu(x, dim, *, max_tile_hw=1024, vmem_tile_budget_bytes=20 * 1024 * 1024):
    """Gated GELU on an NCHW tensor: x (B, 2*dim, H, W) -> (B, dim, H, W)."""
    B, C, H, W = x.shape
    assert C == 2 * dim, "channel axis must be 2*dim"
    itemsize = jnp.dtype(x.dtype).itemsize
    # The gate half starts at row `dim`; it must land on a sublane-tile
    # boundary of the dtype for the in-kernel split to stay aligned.
    sublane = {4: 8, 2: 16, 1: 32}[itemsize]
    assert dim % sublane == 0, (
        f"dim={dim} must be a multiple of {sublane} for dtype {x.dtype}")

    HW = H * W

    # --- lane tiling: lane-dense (multiple of 128), VMEM-budgeted -----------
    # Per grid step (double-buffered): input rows 2*dim + output rows dim.
    bytes_per_lane = 2 * (2 * dim + dim) * itemsize
    tile_cap = max(128, (vmem_tile_budget_bytes // bytes_per_lane) // 128 * 128)
    tile_hw = min(max_tile_hw, tile_cap, _round_up(HW, 128))
    hw_pad = _round_up(HW, tile_hw)

    # --- flatten to clean 2-D (sublane, lane) tiles --------------------------
    x2 = x.reshape(B, C, HW)
    if hw_pad != HW:
        x2 = jnp.pad(x2, ((0, 0), (0, 0), (0, hw_pad - HW)))
    x2 = x2.reshape(B * C, hw_pad)

    n_hw_tiles = hw_pad // tile_hw
    n_elem = B * dim * HW
    cost = pl.CostEstimate(
        flops=4 * n_elem,
        transcendentals=n_elem,
        bytes_accessed=3 * n_elem * itemsize,
    )

    out2 = pl.pallas_call(
        _geglu_kernel,
        out_shape=jax.ShapeDtypeStruct((B * dim, hw_pad), x.dtype),
        grid=(B, n_hw_tiles),
        in_specs=[
            # one contiguous (2*dim, tile_hw) slab per (batch, hw-tile)
            pl.BlockSpec((C, tile_hw), lambda b, s: (b, s)),
        ],
        out_specs=pl.BlockSpec((dim, tile_hw), lambda b, s: (b, s)),
        compiler_params=pltpu.CompilerParams(
            dimension_semantics=("parallel", "parallel"),
            # Raise scoped VMEM (v5e default is 16 MiB) while staying well
            # inside v7x's 64 MiB physical VMEM.
            vmem_limit_bytes=32 * 1024 * 1024,
        ),
        cost_estimate=cost,
    )(x2)

    out = out2.reshape(B, dim, hw_pad)[:, :, :HW].reshape(B, dim, H, W)
    return out


if __name__ == "__main__":
    key = jax.random.PRNGKey(0)

    # Case 1: small NCHW shape consistent with GEGelU usage.
    dim = 8
    B, H, W = 2, 16, 16
    x = jax.random.normal(key, (B, 2 * dim, H, W), dtype=jnp.float32)
    out = jax.block_until_ready(geglu(x, dim))
    ref = x[:, :dim] * jax.nn.gelu(x[:, dim:], approximate=False)
    assert out.shape == (B, dim, H, W)
    assert jnp.allclose(out, ref, atol=1e-5, rtol=1e-5)

    # Case 2: spatial size NOT a multiple of 128 (exercises the lane padding).
    dim2 = 16
    x2 = jax.random.normal(jax.random.PRNGKey(1),
                           (2, 2 * dim2, 14, 14), dtype=jnp.float32)
    out2 = jax.block_until_ready(geglu(x2, dim2))
    ref2 = x2[:, :dim2] * jax.nn.gelu(x2[:, dim2:], approximate=False)
    assert out2.shape == (2, dim2, 14, 14)
    assert jnp.allclose(out2, ref2, atol=1e-5, rtol=1e-5)

    print("KERNEL_OK")
</pallas_src>

<mosaic_0001>
module attributes {stable_mosaic.version = 11 : i64} {
  func.func @_geglu_kernel(%arg0: i32, %arg1: i32, %arg2: memref<16x256xf32, #tpu.memory_space<vmem>>, %arg3: memref<8x256xf32, #tpu.memory_space<vmem>>) attributes {dimension_semantics = [#tpu.dimension_semantics<parallel>, #tpu.dimension_semantics<parallel>], iteration_bounds = array<i64: 2, 1>, scalar_prefetch = 0 : i64, scratch_operands = 0 : i64, tpu.core_type = #tpu.core_type<tc>, window_params = [{transform_indices = @transform_0, window_bounds = array<i64: 16, 256>}, {transform_indices = @transform_1, window_bounds = array<i64: 8, 256>}]} {
    %c0 = arith.constant 0 : index
    %c0_0 = arith.constant 0 : index
    %0 = vector.load %arg2[%c0, %c0_0] : memref<16x256xf32, #tpu.memory_space<vmem>>, vector<8x256xf32>
    %c8 = arith.constant 8 : index
    %c0_1 = arith.constant 0 : index
    %1 = vector.load %arg2[%c8, %c0_1] : memref<16x256xf32, #tpu.memory_space<vmem>>, vector<8x256xf32>
    %cst = arith.constant 5.000000e-01 : f32
    %2 = vector.broadcast %cst : f32 to vector<8x256xf32>
    %3 = arith.mulf %2, %1 : vector<8x256xf32>
    %cst_2 = arith.constant 0.707106769 : f32
    %4 = vector.broadcast %cst_2 : f32 to vector<8x256xf32>
    %5 = arith.mulf %1, %4 : vector<8x256xf32>
    %6 = math.erf %5 : vector<8x256xf32>
    %cst_3 = arith.constant 1.000000e+00 : f32
    %7 = vector.broadcast %cst_3 : f32 to vector<8x256xf32>
    %8 = arith.addf %7, %6 : vector<8x256xf32>
    %9 = arith.mulf %3, %8 : vector<8x256xf32>
    %10 = arith.mulf %0, %9 : vector<8x256xf32>
    %c0_4 = arith.constant 0 : index
    %c0_5 = arith.constant 0 : index
    %11 = vector.load %arg3[%c0_4, %c0_5] : memref<8x256xf32, #tpu.memory_space<vmem>>, vector<8x256xf32>
    tpu.vector_store %arg3[%c0_4, %c0_5], %10 {strides = array<i32>} : memref<8x256xf32, #tpu.memory_space<vmem>>, vector<8x256xf32>,
    return
  }
  func.func @transform_0(%arg0: i32, %arg1: i32) -> (i32, i32) {
    %c0_i32 = arith.constant 0 : i32
    return %arg0, %arg1 : i32, i32
  }
  func.func @transform_1(%arg0: i32, %arg1: i32) -> (i32, i32) {
    %c0_i32 = arith.constant 0 : i32
    return %arg0, %arg1 : i32, i32
  }
}

</mosaic_0001>

<bundles_post_ra>
// kernel: tpu_custom_call.1
= control target key start
LH: loop header
LB: loop body
LE: loop exit
PB: predicated region body
PF: predicated region fallthrough
CT: control target
= control target key end

     0   :  { %6 = vsyncpa [#allocation3], 0  ;;  %s718_s0 = inlined_call_operand.hbm [shape: f32[32,256], index: 0, kind: input, shape index: {}]   ;;  %s719_s1 = inlined_call_operand.hbm [shape: f32[16,256], index: 1, kind: output, shape index: {}]  }
   0x1   :  { %8 = vsyncpa [#allocation3 + $0x1], 0 }
   0x2   :  { %9 = vsyncpa [#allocation4], 0 }
   0x3   :  { %11 = vsyncpa [#allocation4 + $0x1], 0  ;;  %s573_s6 = smov 0   ;;  %s575_s7 = smov 0  }
   0x4   :  { %s577_s8 = smov 0   ;;  %s579_s9 = smov 0  }
   0x5   :  { %s581_s10 = smov 0   ;;  %s583_s11 = smov 0  }
   0x6 LB: > { %s358_s12 = sadd.s32 4294967295, %s559_s11   ;;  %s359_s13 = sadd.s32 4294967294, %s559_s11   ;;  %s559_s11 = sphi %s583_s11, %s17_s11   ;;  %s555_s10 = sphi %s581_s10, %s728_s10   ;;  %s551_s9 = sphi %s579_s9, %s727_s9   ;;  %s547_s8 = sphi %s577_s8, %s726_s8   ;;  %s543_s7 = sphi %s575_s7, %s725_s7   ;;  %s539_s6 = sphi %s573_s6, %s724_s6  }
   0x7   : > { %s29_s14 = sadd.s32 1, %s555_s10  ;;  %s38_s15 = sadd.s32 1, %s547_s8 }
   0x8   : > { %p31_p0 = scmp.ge.s32.totalorder %s29_s14, 2  ;;  %p45_p1 = scmp.ne.s32.totalorder %s547_s8, %s543_s7 }
   0x9   : > { %p46_p2 = scmp.eq.s32.totalorder %s559_s11, 0  ;;  %p51_p3 = scmp.ne.s32.totalorder %s543_s7, %s539_s6 }
   0xa   : > { %s730_s14 = smov (%p31_p0, %s29_s14), 0  ;;  %p52_p5 = scmp.eq.s32.totalorder %s358_s12, 0 }
   0xb   : > { %p614_p4 = por %p46_p2, %p45_p1  ;;  %s33_s17 = ssub.s32 %s555_s10, %s730_s14 }
   0xc   : > { %p77_p6 = scmp.eq.s32.totalorder %s358_s12, 1  ;;  %p36_p7 = scmp.eq.s32.totalorder %s33_s17, 0 }
   0xd   : > { %p620_p8 = por %p52_p5, %p51_p3  ;;  %p83_p10 = scmp.eq.s32.totalorder %s359_s13, 1 }
   0xe   : > { %p624_p9 = por %p77_p6, %p45_p1  ;;  %p361_p12 = scmp.ge.s32.totalorder %s559_s11, 2 }
   0xf   : > { %s629_s20 = scalar_select %p36_p7, %s547_s8, %s38_s15  }
  0x10   : > { %p631_p11 = por %p83_p10, %p51_p3  ;;  %p391_p13 = scmp.lt.s32.totalorder %s559_s11, 2 }
  0x11   : > { %s103_s22 = sand.u32 1, %s547_s8   ;;  %s377_s24 = sshll.u32 %s555_s10, 5 }
  0x12   : > { %s362_s23 = sshll.u32 %s103_s22, 5  ;;  %s115_s27 = scalar_lea.hbm %s718_s0, %s377_s24 }
  0x13   : > { %s107_s28 = scalar_lea.vmem [#allocation2], %s362_s23  ;;  %s116_s30 = sshll.u32 %s115_s27, 4  ;;  %s117_s30 = int_to_ptr.hbm [resolvable:$true] %s116_s30 }
  0x14   : > { %s118_s29 = sshll.u32 %s107_s28, 4  ;;  %p384_p0 = pnand %p391_p13, %p614_p4  ;;  %s119_s29 = int_to_ptr.vmem [resolvable:$true] %s118_s29 }
  0x15   : > { %p366_p1 = scmp.ge.s32.totalorder %s559_s11, 1  ;;  %s104_s2 = scalar_lea.sflag [#allocation3], %s103_s22 }
  0x16   : > { %s561_s3 = smov 256   ;;  %s562_s4 = smov 16  }
  0x17   : > { %386 = dma.hbm_to_vmem [thread:$0]  (!%p384_p0), %s117_s30, 512, %s119_s29, %s104_s2, %s561_s3, %s561_s3, %s562_s4  }
  0x18   : > { %p126_p2 = scmp.lt.s32.totalorder %s559_s11, 3 }
  0x1a   : > { %p127_p3 = pnand %p366_p1, %p126_p2 }
  0x1b   : > { %s647_s5 = sand.u32 (!%p127_p3), 1, %s543_s7  }
  0x1c   : > { %130 = sbr.rel (%p127_p3) target bundleno = 92 (0x5c), region = 24  ;;  %s367_s12 = sshll.u32 (!%p127_p3), %s647_s5, 5 }
  0x1d   : > { %s133_s13 = scalar_lea.sflag (!%p127_p3), [#allocation3], %s647_s5  ;;  %s651_s15 = scalar_lea.vmem (!%p127_p3), [#allocation2], %s367_s12 }
  0x21   : > { %530 = dma.done.wait (%p620_p8), %s133_s13, 512  }
  0x22   : > { %532 = vsyncadd (%p620_p8), %s133_s13, 4294966784  ;;  %v658_v0 = vld [vmem:[%s651_s15 + $0x10] sm:$0xff]  ;;  %v661_v1 = vld [vmem:[%s651_s15 + $0x18] sm:$0xff]  ;;  %s368_s16 = sshll.u32 %s647_s5, 4  ;;  %s378_s17 = sshll.u32 %s551_s9, 4 }
  0x23   : > { %v664_v2 = vmul.f32 0.70710677, %v658_v0  ;;  %v667_v3 = vmul.f32 0.70710677, %v661_v1  ;;  %s269_s23 = scalar_lea.hbm %s719_s1, %s378_s17  ;;  %s155_s24 = scalar_lea.vmem [#allocation5], %s368_s16 }
  0x24   : > { %s271_s25 = sshll.u32 %s155_s24, 4  ;;  %s273_s9 = sshll.u32 %s269_s23, 4  ;;  %s272_s25 = int_to_ptr.vmem [resolvable:$true] %s271_s25  ;;  %s274_s9 = int_to_ptr.hbm [resolvable:$true] %s273_s9 }
  0x25   : > { %v167_v4 = vmul.f32 %v664_v2, %v664_v2  ;;  %v207_v5 = vmul.f32 %v667_v3, %v667_v3  ;;  %s256_s26 = scalar_lea.sflag [#allocation4], %s647_s5  ;;  %s491_s27 = sshra.s32 %s274_s9, 4  ;;  %s492_s27 = int_to_ptr.hbm [resolvable:$true] %s491_s27 }
  0x26   : > { %s493_s28 = scalar_lea.hbm %s492_s27, 16  ;;  %s497_s2 = scalar_lea.hbm %s719_s1, 32 }
  0x27   : > { %v168_v6 = vmin.f32 %v167_v4, 16.0  ;;  %v208_v7 = vmin.f32 %v207_v5, 16.0  ;;  %p494_p4 = scmp.ne.s32.totalorder %s492_s27, %s493_s28  ;;  %p498_p7 = scmp.lt.s32.totalorder %s492_s27, %s719_s1 }
  0x28   : > { %p499_p8 = scmp.lt.s32.totalorder %s497_s2, %s493_s28 }
  0x29   : > { %v169_v8 = vmul.f32 2.1237322e-06, %v168_v6  ;;  %v180_v9 = vmul.f32 3.8918573e-05, %v168_v6  ;;  %v209_v10 = vmul.f32 2.1237322e-06, %v208_v7  ;;  %p495_p5 = pnand %p494_p4, %p624_p9 }
  0x2a   : > { %v220_v11 = vmul.f32 3.8918573e-05, %v208_v7  ;;  %p500_p10 = por %p499_p8, %p498_p7 }
  0x2b   : > { %v170_v12 = vadd.f32 0.00028619796, %v169_v8  ;;  %v181_v13 = vadd.f32 0.001143296, %v180_v9  ;;  %v210_v14 = vadd.f32 0.00028619796, %v209_v10  ;;  %p496_p6 = pneg %p495_p5 }
  0x2c   : > { %v221_v15 = vadd.f32 0.001143296, %v220_v11 }
  0x2d   : > { %v171_v16 = vmul.f32 %v170_v12, %v168_v6  ;;  %v182_v17 = vmul.f32 %v181_v13, %v168_v6  ;;  %v211_v18 = vmul.f32 %v210_v14, %v208_v7  ;;  %v164_v13 = vmul.f32 0.5, %v661_v1  ;;  %p501_p13 = pnand %p500_p10, %p496_p6 }
  0x2e   : > { %v222_v19 = vmul.f32 %v221_v15, %v208_v7  ;;  %v159_v15 = vld [vmem:[%s651_s15] sm:$0xff] }
  0x2f   : > { %v172_v20 = vadd.f32 0.0036580483, %v171_v16  ;;  %v183_v21 = vadd.f32 0.014752088, %v182_v17  ;;  %v212_v22 = vadd.f32 0.0036580483, %v211_v18 }
  0x30   : > { %v223_v23 = vadd.f32 0.014752088, %v222_v19  ;;  %v160_v18 = vld [vmem:[%s651_s15 + $0x8] sm:$0xff] }
  0x31   : > { %v173_v24 = vmul.f32 %v172_v20, %v168_v6  ;;  %v184_v25 = vmul.f32 %v183_v21, %v168_v6  ;;  %v213_v26 = vmul.f32 %v212_v22, %v208_v7 }
  0x32   : > { %v224_v27 = vmul.f32 %v223_v23, %v208_v7 }
  0x33   : > { %v185_v28 = vadd.f32 0.112945676, %v184_v25  ;;  %v174_v29 = vadd.f32 0.05243302, %v173_v24  ;;  %v214_v32 = vadd.f32 0.05243302, %v213_v26 }
  0x34   : > { %v225_v30 = vadd.f32 0.112945676, %v224_v27 }
  0x35   : > { %v186_v31 = vmul.f32 %v185_v28, %v168_v6  ;;  %v175_v35 = vmul.f32 %v174_v29, %v168_v6  ;;  %v215_v38 = vmul.f32 %v214_v32, %v208_v7 }
  0x36   : > { %v226_v33 = vmul.f32 %v225_v30, %v208_v7 }
  0x37   : > { %v187_v34 = vadd.f32 0.4994258, %v186_v31  ;;  %v176_v41 = vadd.f32 0.18741608, %v175_v35  ;;  %v216_v43 = vadd.f32 0.18741608, %v215_v38 }
  0x38   : > { %v227_v36 = vadd.f32 0.4994258, %v226_v33 }
  0x39   : > { %v188_v37 = vmul.f32 %v187_v34, %v168_v6  ;;  %v177_v44 = vmul.f32 %v176_v41, %v168_v6  ;;  %v217_v45 = vmul.f32 %v216_v43, %v208_v7 }
  0x3a   : > { %v228_v39 = vmul.f32 %v227_v36, %v208_v7 }
  0x3b   : > { %v189_v40 = vadd.f32 1.0, %v188_v37  ;;  %v178_v48 = vadd.f32 1.1283791, %v177_v44  ;;  %v218_v51 = vadd.f32 1.1283791, %v217_v45 }
  0x3c   : > { %v229_v42 = vadd.f32 1.0, %v228_v39 }
  0x3d   : > { %443 = vrcp.f32 %v189_v40  ;;  %vm195_vm0 = vweird.f32 %v189_v40  ;;  %v201_v50 = vand.u32 2147483648, %v189_v40  ;;  %v199_v54 = vand.u32 2147483647, %v189_v40 }
  0x3e   : > { %445 = vrcp.f32 %v229_v42  ;;  %v241_v55 = vand.u32 2147483648, %v229_v42  ;;  %vm235_vm2 = vweird.f32 %v229_v42  ;;  %v239_v57 = vand.u32 2147483647, %v229_v42 }
  0x3f   : > { %v202_v59 = vor.u32 1.1754944e-38, %v201_v50  ;;  %v179_v61 = vmul.f32 %v178_v48, %v664_v2  ;;  %vm200_vm5 = vcmp.eq.f32.partialorder %v199_v54, 8.507059e+37  ;;  %v219_v4 = vmul.f32 %v218_v51, %v667_v3 }
  0x40   : > { %v242_v63 = vor.u32 1.1754944e-38, %v241_v55  ;;  %vm240_vm7 = vcmp.eq.f32.partialorder %v239_v57, 8.507059e+37  ;;  %v163_v2 = vmul.f32 0.5, %v658_v0 }
  0x43   : > { %v444_v46 = vpop.eup %443 }
  0x44   : > { %v446_v47 = vpop.eup %445  ;;  %v191_v49 = vmul.f32 %v444_v46, %v189_v40  ;;  %vm196_vm1 = vweird.f32 %v444_v46 }
  0x45   : > { %v231_v52 = vmul.f32 %v446_v47, %v229_v42  ;;  %vm236_vm3 = vweird.f32 %v446_v47  ;;  %vm197_vm4 = vmor %vm195_vm0, %vm196_vm1 }
  0x46   : > { %v192_v53 = vsub.f32 1.0, %v191_v49  ;;  %vm237_vm6 = vmor %vm235_vm2, %vm236_vm3 }
  0x47   : > { %v232_v56 = vsub.f32 1.0, %v231_v52 }
  0x48   : > { %v193_v58 = vmul.f32 %v444_v46, %v192_v53 }
  0x49   : > { %v233_v60 = vmul.f32 %v446_v47, %v232_v56 }
  0x4a   : > { %v194_v62 = vadd.f32 %v444_v46, %v193_v58 }
  0x4b   : > { %v234_v5 = vadd.f32 %v446_v47, %v233_v60 }
  0x4c   : > { %v198_v6 = vsel %vm197_vm4, %v444_v46, %v194_v62 }
  0x4d   : > { %v203_v7 = vsel %vm200_vm5, %v202_v59, %v198_v6  ;;  %v238_v8 = vsel %vm237_vm6, %v446_v47, %v234_v5 }
  0x4e   : > { %v204_v9 = vmul.f32 %v203_v7, %v179_v61  ;;  %v243_v10 = vsel %vm240_vm7, %v242_v63, %v238_v8 }
  0x4f   : > { %v244_v11 = vmul.f32 %v243_v10, %v219_v4 }
  0x50   : > { %v369_v12 = vclamps-f32 %v204_v9, 1.0 }
  0x51   : > { %v370_v14 = vclamps-f32 %v244_v11, 1.0 }
  0x52   : > { %v247_v3 = vadd.f32 1.0, %v369_v12 }
  0x53   : > { %v248_v16 = vadd.f32 1.0, %v370_v14 }
  0x54   : > { %v249_v17 = vmul.f32 %v247_v3, %v163_v2 }
  0x55   : > { %v250_v19 = vmul.f32 %v248_v16, %v164_v13 }
  0x56   : > { %v251_v0 = vmul.f32 %v249_v17, %v159_v15 }
  0x57   : > { %v252_v20 = vmul.f32 %v250_v19, %v160_v18 }
  0x58   : > { %253 = vst [vmem:[%s155_s24] sm:$0xff] %v251_v0 }
  0x59   : > { %254 = vst [vmem:[%s155_s24 + $0x8] sm:$0xff] %v252_v20 }
  0x5a   : > { %504 = shalt.err (!%p501_p13)
}
  0x5b   : > { %381 = dma.vmem_to_hbm [thread:$0]  (%p624_p9), %s272_s25, 256, %s274_s9, %s256_s26  }
  0x5c PF: > { %s285_s5 = sand.u32 1, %s539_s6   ;;  %p388_p0 = pnand %p361_p12, %p631_p11 }
  0x5d   : > { %s286_s12 = scalar_lea.sflag [#allocation4], %s285_s5 }
  0x5e   : > { %p389_p1 = pneg %p388_p0 }
  0x60   : > { %534 = dma.done.wait (%p389_p1), %s286_s12, 256  }
  0x61   : > { %536 = vsyncadd (%p389_p1), %s286_s12, 4294967040  ;;  %s17_s11 = sadd.s32 1, %s559_s11   ;;  %s724_s6 = smov %s543_s7 }
  0x62   : > { %p14_p2 = scmp.ge.s32.totalorder %s17_s11, 4   ;;  %s725_s7 = smov %s547_s8 }
  0x63   : > { %s726_s8 = smov %s629_s20  ;;  %s727_s9 = smov %s555_s10 }
  0x64   : > { %s728_s10 = smov %s730_s14  ;;  %16 = sbr.rel (!%p14_p2) target bundleno = 6 (0x6), region = 69 }
  0x69   :  { %292 = vsyncpa [#allocation3], 1 }
  0x6a   :  { %294 = vsyncpa [#allocation3 + $0x1], 1 }
  0x6b   :  { %295 = vsyncpa [#allocation4], 1 }
  0x6c   :  { %297 = vsyncpa [#allocation4 + $0x1], 1 }

</bundles_post_ra>
